<compile_context>
chip_gen: v7x
topology: tpu7x:2x2x1
jax: 0.10.0
libtpu: 0.0.40
codegen_flags: <defaults>
</compile_context>

<pallas_src>
import math

import jax
import jax.numpy as jnp
from jax import lax
from jax.experimental import pallas as pl
from jax.experimental.pallas import tpu as pltpu


def _round_up(x, m):
    return ((x + m - 1) // m) * m


# ---------------------------------------------------------------------------
# Kernels
# ---------------------------------------------------------------------------

def _dense_mlp_kernel_f32_out(x_ref, w_ref, o_ref):
    """Tiled matmul; accumulates directly into the resident f32 output tile."""
    @pl.when(pl.program_id(2) == 0)
    def _():
        o_ref[...] = jnp.zeros_like(o_ref)

    # Contract last dim of x with last dim of w  ==  x @ w.T  (MXU, f32 acc).
    o_ref[...] += lax.dot_general(
        x_ref[...],
        w_ref[...],
        dimension_numbers=(((1,), (1,)), ((), ())),
        preferred_element_type=jnp.float32,
    )


def _dense_mlp_kernel_scratch(x_ref, w_ref, o_ref, acc_ref):
    """Variant with an f32 VMEM accumulator, for non-f32 output dtypes."""
    @pl.when(pl.program_id(2) == 0)
    def _():
        acc_ref[...] = jnp.zeros_like(acc_ref)

    acc_ref[...] += lax.dot_general(
        x_ref[...],
        w_ref[...],
        dimension_numbers=(((1,), (1,)), ((), ())),
        preferred_element_type=jnp.float32,
    )

    @pl.when(pl.program_id(2) == pl.num_programs(2) - 1)
    def _():
        o_ref[...] = acc_ref[...].astype(o_ref.dtype)


def _dense_mlp_small_kernel(x_ref, w_ref, o_ref):
    """Single-block fast path: whole problem resident in VMEM, grid-less."""
    o_ref[...] = lax.dot_general(
        x_ref[...],
        w_ref[...],
        dimension_numbers=(((1,), (1,)), ((), ())),
        preferred_element_type=jnp.float32,
    ).astype(o_ref.dtype)


# ---------------------------------------------------------------------------
# Wrapper
# ---------------------------------------------------------------------------

_SMALL_PROBLEM_BYTES = 4 * 1024 * 1024  # fast-path threshold


def dense_mlp_forward(x, weight, *, tm=512, tn=512, tk=1024, compute_dtype=None):
    """x: (B, in_size), weight: (out_size, in_size) -> (B, out_size).

    compute_dtype: optionally cast operands (e.g. jnp.bfloat16) for the MXU;
    accumulation and output stay in the original (f32) dtype.
    """
    B, K = x.shape
    N, Kw = weight.shape
    assert K == Kw, (K, Kw)

    out_dtype = x.dtype
    if compute_dtype is not None and compute_dtype != x.dtype:
        x = x.astype(compute_dtype)
        weight = weight.astype(compute_dtype)

    in_bytes = jnp.dtype(x.dtype).itemsize
    out_bytes = jnp.dtype(out_dtype).itemsize

    # ---- single-block fast path (tiny module shapes) ----------------------
    if (B * K + N * K + B * N) * in_bytes <= _SMALL_PROBLEM_BYTES:
        return pl.pallas_call(
            _dense_mlp_small_kernel,
            out_shape=jax.ShapeDtypeStruct((B, N), out_dtype),
        )(x, weight)

    # ---- tiled path --------------------------------------------------------
    # Sublane alignment for the M (second-to-last) dim of x / output tiles:
    # 8 rows for 32-bit, 16 for 16-bit (bf16 packing), 32 for 8-bit.
    m_align = {4: 8, 2: 16, 1: 32}.get(in_bytes, 8)

    Mp_min = _round_up(B, m_align)
    if Mp_min <= 1024:
        # Cover the whole batch with one M tile: the weight then streams from
        # HBM exactly once per call (dominant cost for small-batch inference).
        tm = Mp_min
    else:
        tm = _round_up(min(tm, Mp_min), m_align)
    tn = min(tn, _round_up(N, 128))   # lane-dense output tiles (multiple of 128)
    tk = min(tk, _round_up(K, 128))

    Mp = _round_up(B, tm)
    Np = _round_up(N, tn)
    Kp = _round_up(K, tk)

    # Pad only the dims that need it (zero-padding K is a matmul no-op).
    if (Mp, Kp) != (B, K):
        x = jnp.pad(x, ((0, Mp - B), (0, Kp - K)))
    if (Np, Kp) != (N, K):
        weight = jnp.pad(weight, ((0, Np - N), (0, Kp - K)))

    grid = (Mp // tm, Np // tn, Kp // tk)

    if out_dtype == jnp.float32:
        kernel = _dense_mlp_kernel_f32_out
        scratch_shapes = []
        scratch_bytes = 0
    else:
        kernel = _dense_mlp_kernel_scratch
        scratch_shapes = [pltpu.VMEM((tm, tn), jnp.float32)]
        scratch_bytes = tm * tn * 4

    # Right-size the VMEM limit: double-buffered x/w/out tiles + scratch,
    # plus headroom for Mosaic internal scratch.  (Defaults land ~32 MiB,
    # safely under the v7x 64 MiB physical VMEM.)
    vmem_need = (2 * (tm * tk + tn * tk) * in_bytes
                 + 2 * tm * tn * out_bytes
                 + scratch_bytes)
    vmem_limit = max(int(vmem_need * 3 // 2) + (4 << 20), 32 << 20)

    flops = 2 * Mp * Np * Kp
    bytes_accessed = (Mp * Kp * in_bytes * (Np // tn)      # x re-read per N tile
                      + Np * Kp * in_bytes * (Mp // tm)    # w re-read per M tile
                      + Mp * Np * out_bytes)               # output writeback

    out = pl.pallas_call(
        kernel,
        out_shape=jax.ShapeDtypeStruct((Mp, Np), out_dtype),
        grid_spec=pltpu.PrefetchScalarGridSpec(
            num_scalar_prefetch=0,
            grid=grid,
            in_specs=[
                pl.BlockSpec((tm, tk), lambda i, j, k: (i, k)),   # x tile
                pl.BlockSpec((tn, tk), lambda i, j, k: (j, k)),   # weight tile (native layout)
            ],
            out_specs=pl.BlockSpec((tm, tn), lambda i, j, k: (i, j)),
            scratch_shapes=scratch_shapes,
        ),
        compiler_params=pltpu.CompilerParams(
            dimension_semantics=("parallel", "parallel", "arbitrary"),
            vmem_limit_bytes=vmem_limit,
        ),
        cost_estimate=pl.CostEstimate(
            flops=int(flops),
            transcendentals=0,
            bytes_accessed=int(bytes_accessed),
        ),
    )(x, weight)

    if (Mp, Np) != (B, N):
        out = out[:B, :N]
    return out


# ---------------------------------------------------------------------------
# Parameter init mirroring the PyTorch module's reset_parameters
# ---------------------------------------------------------------------------

def init_dense_mlp_params(key, in_size, out_size):
    k_w, k_b = jax.random.split(key)
    # kaiming_uniform_(a=sqrt(5)) on (out_size, in_size):
    #   gain = sqrt(2 / (1 + a^2)) = sqrt(1/3); bound = gain * sqrt(3 / fan_in)
    fan_in = in_size
    bound_w = math.sqrt(1.0 / 3.0) * math.sqrt(3.0 / fan_in)
    weight = jax.random.uniform(
        k_w, (out_size, in_size), jnp.float32, -bound_w, bound_w
    )
    bound_b = 1.0 / math.sqrt(fan_in)
    bias = jax.random.uniform(k_b, (out_size,), jnp.float32, -bound_b, bound_b)
    threshold = jnp.zeros((1,), jnp.float32)
    mask = jnp.ones((in_size,), jnp.float32)
    # bias / threshold / mask are unused in the module's forward (kept for parity).
    return weight, bias, threshold, mask


if __name__ == "__main__":
    key = jax.random.PRNGKey(0)
    k_params, k_x, k_w2, k_x2, k_w3, k_x3 = jax.random.split(key, 6)

    # --- 1) tiny module shapes: exercises the single-block fast path --------
    B, in_size, out_size = 8, 32, 64
    weight, bias, threshold, mask = init_dense_mlp_params(k_params, in_size, out_size)
    x = jax.random.normal(k_x, (B, in_size), jnp.float32)

    out = jax.block_until_ready(dense_mlp_forward(x, weight))
    ref = x @ weight.T
    assert out.shape == (B, out_size)
    assert jnp.allclose(out, ref, atol=1e-5, rtol=1e-5), "tiny f32 mismatch"

    # --- 2) tiled path: whole-batch M tile, N/K tiling, multi-step K reduce --
    B2, in2, out2 = 256, 2048, 1024
    w2 = jax.random.normal(k_w2, (out2, in2), jnp.float32) * 0.02
    x2 = jax.random.normal(k_x2, (B2, in2), jnp.float32)

    out2_v = jax.block_until_ready(dense_mlp_forward(x2, w2))
    ref2 = x2 @ w2.T
    assert out2_v.shape == (B2, out2)
    assert jnp.allclose(out2_v, ref2, atol=2e-3, rtol=2e-3), "tiled f32 mismatch"

    # --- 3) bf16-operand path (f32 accumulation / output), tiled ------------
    out3_v = jax.block_until_ready(
        dense_mlp_forward(x2, w2, compute_dtype=jnp.bfloat16)
    )
    ref3 = jnp.dot(
        x2.astype(jnp.bfloat16),
        w2.astype(jnp.bfloat16).T,
        preferred_element_type=jnp.float32,
    )
    assert out3_v.dtype == jnp.float32
    assert jnp.allclose(out3_v, ref3, atol=2e-2, rtol=2e-2), "bf16 mismatch"

    # --- 4) non-tile-aligned shapes: exercises the minimal-padding path -----
    B4, in4, out4 = 100, 300, 200
    w4 = jax.random.normal(k_w3, (out4, in4), jnp.float32) * 0.05
    x4 = jax.random.normal(k_x3, (B4, in4), jnp.float32)

    # Force the tiled path despite the small size (tests padding + slicing).
    out4_v = jax.block_until_ready(
        dense_mlp_forward(jnp.tile(x4, (6, 1)), w4)[:B4]
    )
    ref4 = x4 @ w4.T
    assert jnp.allclose(out4_v, ref4, atol=1e-3, rtol=1e-3), "unaligned mismatch"

    print("KERNEL_OK")
</pallas_src>

<mosaic_0001>
module attributes {stable_mosaic.version = 11 : i64} {
  func.func @_dense_mlp_small_kernel(%arg0: memref<8x32xf32, #tpu.memory_space<vmem>>, %arg1: memref<64x32xf32, #tpu.memory_space<vmem>>, %arg2: memref<8x64xf32, #tpu.memory_space<vmem>>) attributes {dimension_semantics = [], scalar_prefetch = 0 : i64, scratch_operands = 0 : i64, tpu.core_type = #tpu.core_type<tc>} {
    %c0 = arith.constant 0 : index
    %c0_0 = arith.constant 0 : index
    %0 = vector.load %arg0[%c0, %c0_0] : memref<8x32xf32, #tpu.memory_space<vmem>>, vector<8x32xf32>
    %c0_1 = arith.constant 0 : index
    %c0_2 = arith.constant 0 : index
    %1 = vector.load %arg1[%c0_1, %c0_2] : memref<64x32xf32, #tpu.memory_space<vmem>>, vector<64x32xf32>
    %cst = arith.constant dense<0.000000e+00> : vector<8x64xf32>
    %2 = tpu.matmul %0, %1, %cst {dimension_numbers = #tpu.dot_dimension_numbers<[1], [1], [0], [0], [0, 0, 1, 0], [], []>} : vector<8x32xf32>, vector<64x32xf32>, vector<8x64xf32> -> vector<8x64xf32>
    %c0_3 = arith.constant 0 : index
    %c0_4 = arith.constant 0 : index
    %3 = vector.load %arg2[%c0_3, %c0_4] : memref<8x64xf32, #tpu.memory_space<vmem>>, vector<8x64xf32>
    tpu.vector_store %arg2[%c0_3, %c0_4], %2 {strides = array<i32>} : memref<8x64xf32, #tpu.memory_space<vmem>>, vector<8x64xf32>,
    return
  }
}

</mosaic_0001>

<bundles_post_ra>
// kernel: tpu_custom_call.1
= control target key start
LH: loop header
LB: loop body
LE: loop exit
PB: predicated region body
PF: predicated region fallthrough
CT: control target
= control target key end

     0   :  { %vm21_vm0 = vcmask 261120   ;;  %v216_v2 = vmov 0.0|0.0   ;;  %vm217_vm2 = vmmov 0   ;;  %v218_v5 = vmov 0.0   ;;  %s289_s0 = inlined_call_operand.vmem [shape: f32[8,32], index: 0, kind: input, shape index: {}]   ;;  %s290_s1 = inlined_call_operand.vmem [shape: f32[64,32], index: 1, kind: input, shape index: {}]   ;;  %s291_s2 = inlined_call_operand.hbm [shape: f32[8,64], index: 2, kind: output, shape index: {}]  }
   0x1   :  { %v13_v0 = vld [vmem:[%s290_s1] sm:$0xff]  ;;  %v14_v1 = vld [vmem:[%s290_s1 + $0x8] sm:$0xff]  ;;  %172 = vmatprep.subr.bf16.mxu0 %v216_v2  ;;  %vm243_vm1 = vmpackc.low %vm21_vm0, %vm21_vm0  ;;  %169 = vmatprep.mubr.msk.f32.mxu0 %vm217_vm2, %v218_v5 }
   0x2   :  { %v173_v3 = vpack.c.bf16 %v14_v1, %v13_v0 }
   0x4   :  { %175 = vmatpush3.bf16.xpose.msk.msra.mxu0 %vm243_vm1, %v173_v3 }
   0x5   :  { %7 = vsyncpa [#allocation3], 0  ;;  %176 = vmatprep.subr.bf16.mxu0 %v216_v2  ;;  %v15_v6 = vld [vmem:[%s290_s1 + $0x10] sm:$0xff]  ;;  %v16_v7 = vld [vmem:[%s290_s1 + $0x18] sm:$0xff]  ;;  %s219_s27 = smov [#allocation2]   ;;  %vm119_vm3 = vcmask 523264  }
   0x6   :  { %v177_v8 = vpack.c.bf16 %v16_v7, %v15_v6  ;;  %v17_v9 = vld [vmem:[%s290_s1 + $0x20] sm:$0xff]  ;;  %v18_v10 = vld [vmem:[%s290_s1 + $0x28] sm:$0xff]  ;;  %v19_v12 = vld [vmem:[%s290_s1 + $0x30] sm:$0xff]  ;;  %s127_s28 = sshll.u32 %s219_s27, 4  ;;  %s128_s28 = int_to_ptr.vmem [resolvable:$true] %s127_s28 }
   0x7   :  { %v181_v11 = vpack.c.bf16 %v18_v10, %v17_v9  ;;  %v20_v13 = vld [vmem:[%s290_s1 + $0x38] sm:$0xff]  ;;  %v12_v15 = vld [vmem:[%s289_s0] sm:$0xff]  ;;  %s192_s29 = scalar_lea.vmem %s128_s28, 128  ;;  %p197_p1 = scmp.lt.s32.totalorder %s128_s28, %s128_s28 }
   0x8   :  { %v185_v14 = vpack.c.bf16 %v20_v13, %v19_v12  ;;  %p193_p0 = scmp.ne.s32.totalorder %s128_s28, %s192_s29  ;;  %p198_p2 = scmp.lt.s32.totalorder %s192_s29, %s192_s29 }
   0xa   :  { %p199_p3 = por %p198_p2, %p197_p1 }
   0xc   :  { %179 = vmatpush3.bf16.xpose.msk.msra.mxu0 %vm243_vm1, %v177_v8  ;;  %p200_p4 = pnand %p199_p3, %p193_p0 }
   0xd   :  { %180 = vmatprep.subr.bf16.mxu0 %v216_v2 }
  0x14   :  { %183 = vmatpush3.bf16.xpose.msk.msra.mxu0 %vm243_vm1, %v181_v11 }
  0x15   :  { %184 = vmatprep.subr.bf16.mxu0 %v216_v2 }
  0x1c   :  { %187 = vmatpush3.bf16.xpose.msk.msra.mxu0 %vm243_vm1, %v185_v14 }
  0x23   :  { %170 = vmatmul.mubr.msk.f32.vlgmr.msra.gmra.mrb[0].mxu0 %vm21_vm0, %v12_v15 }
  0xf6   :  { %v115_v16 = vpop.f32.mrb[0].mxu0 }
  0xf7   :  { %120 = vst.msk [vmem:[#allocation2] sm:$0xff] %vm119_vm3, %v115_v16  ;;  %v171_v17 = vpop.f32.mrb[1].mxu0 }
  0xf8   :  { %203 = shalt.err (!%p200_p4)
}
  0xf9   :  { %s204_s0 = scalar_lea.hbm %s291_s2, 128 }
  0xfa   :  { %p205_p5 = scmp.ne.s32.totalorder %s291_s2, %s204_s0  ;;  %p208_p6 = scmp.lt.u32.totalorder %s204_s0, %s291_s2 }
  0xfc   :  { %p210_p7 = pnand %p208_p6, %p205_p5 }
  0xfe   :  { %213 = shalt.err (!%p210_p7)
}
  0xff   :  { %130 = dma.vmem_to_hbm [thread:$0]  %s128_s28, 128, %s291_s2, [#allocation3]  }
 0x100   :  { %214 = dma.done.wait [#allocation3], 128  }
 0x101   :  { %215 = vsyncadd [#allocation3], 4294967168 }
 0x102   :  { %134 = vsyncpa [#allocation3], 1 }

</bundles_post_ra>
